<compile_context>
chip_gen: v5e
topology: v5e:2x2
jax: 0.10.0
libtpu: 0.0.40
codegen_flags: <defaults>
</compile_context>

<pallas_src>
import jax
import jax.numpy as jnp
from jax.experimental import pallas as pl
from jax.experimental.pallas import tpu as pltpu


_MAX_CHUNKS = 8              # enough in-flight work to hide DMA issue latency
_MIN_CHUNK_BYTES = 1 << 20   # don't bother splitting copies below ~1 MiB/chunk


def _pick_chunks(leading, total_bytes):
    """Split the leading axis into a few large, nearly equal static chunks."""
    n = max(1, min(_MAX_CHUNKS, leading, total_bytes // _MIN_CHUNK_BYTES))
    base, rem = divmod(leading, n)
    chunks, off = [], 0
    for i in range(n):
        sz = base + (1 if i < rem else 0)
        chunks.append((off, sz))
        off += sz
    return tuple(chunks)


def _make_hbm_copy_kernel(chunks, ndim):
    """Direct HBM->HBM chunked copy; keeps at most two DMAs in flight."""

    def index(off, n):
        # Slice the leading axis; remaining axes full (chunk stays contiguous).
        return (pl.ds(off, n),) + (slice(None),) * (ndim - 1)

    def kernel(x_ref, o_ref, sem):
        in_flight = []
        for i, (off, n) in enumerate(chunks):
            cp = pltpu.make_async_copy(
                x_ref.at[index(off, n)],
                o_ref.at[index(off, n)],
                sem.at[i % 2],
            )
            cp.start()
            in_flight.append(cp)
            if i >= 1:
                # Frees semaphore slot (i-1)%2 before it is reused by chunk i+1,
                # keeping <= 2 DMAs in flight.
                in_flight[i - 1].wait()
        in_flight[-1].wait()

    return kernel


def _noop_kernel(x_ref, o_ref):
    # Output buffer aliases the input (input_output_aliases={0: 0}); the squeezed
    # bytes are already in place, so there is nothing to do.
    pass


def squeeze_pallas(x, *, force_copy=False, donate=False):
    """torch-style x.squeeze(): drop all size-1 dims.

    Default: metadata-only (zero-copy) squeeze. Set force_copy=True to
    materialize a fresh HBM buffer via a direct HBM->HBM DMA kernel; add
    donate=True if the caller can donate x (output aliases input, 1x footprint).
    """
    out_shape = tuple(d for d in x.shape if d != 1)

    if not force_copy:
        # Metadata-only path (the recommended one): zero HBM traffic.
        return jnp.squeeze(x)

    if x.size == 0 or len(out_shape) == 0:
        # Empty array or 0-d result: nothing worth copying; metadata-only is exact.
        return jnp.squeeze(x)

    x_sq = x.reshape(out_shape)          # metadata-only collapse of unit dims
    itemsize = jnp.dtype(x.dtype).itemsize
    total_bytes = x.size * itemsize

    if donate:
        # Output is the (donated) input buffer itself -> no HBM traffic at all.
        return pl.pallas_call(
            _noop_kernel,
            out_shape=jax.ShapeDtypeStruct(out_shape, x.dtype),
            in_specs=[pl.BlockSpec(memory_space=pl.ANY)],
            out_specs=pl.BlockSpec(memory_space=pl.ANY),
            input_output_aliases={0: 0},
        )(x_sq)

    chunks = _pick_chunks(out_shape[0], total_bytes)

    return pl.pallas_call(
        _make_hbm_copy_kernel(chunks, len(out_shape)),
        out_shape=jax.ShapeDtypeStruct(out_shape, x.dtype),
        in_specs=[pl.BlockSpec(memory_space=pl.ANY)],
        out_specs=pl.BlockSpec(memory_space=pl.ANY),
        scratch_shapes=[pltpu.SemaphoreType.DMA((2,))],
        cost_estimate=pl.CostEstimate(
            flops=0,
            transcendentals=0,
            bytes_accessed=2 * total_bytes,
        ),
    )(x_sq)


if __name__ == "__main__":
    key = jax.random.PRNGKey(0)
    k1, k2 = jax.random.split(key)

    # Small shape with unit dims: (2, 1, 4, 1, 16, 128) -> (2, 4, 16, 128)
    x1 = jax.random.normal(k1, (2, 1, 4, 1, 16, 128), dtype=jnp.float32)
    ref1 = jnp.squeeze(x1)

    # Default (recommended) path: metadata-only squeeze, no kernel launched.
    y_fast = jax.block_until_ready(squeeze_pallas(x1))
    assert y_fast.shape == ref1.shape and y_fast.dtype == ref1.dtype
    assert bool(jnp.all(y_fast == ref1))

    # Forced materialized copy: direct HBM->HBM DMA kernel (single chunk here).
    y1 = jax.block_until_ready(squeeze_pallas(x1, force_copy=True))
    assert y1.shape == ref1.shape and y1.dtype == ref1.dtype
    assert bool(jnp.all(y1 == ref1))

    # Larger input (~2 MiB) so the kernel exercises >= 2 pipelined DMA chunks.
    x2 = jax.random.normal(k2, (4, 1, 512, 256), dtype=jnp.float32)
    ref2 = jnp.squeeze(x2)
    y2 = jax.block_until_ready(squeeze_pallas(x2, force_copy=True))
    assert y2.shape == ref2.shape and y2.dtype == ref2.dtype
    assert bool(jnp.all(y2 == ref2))

    print("KERNEL_OK")
</pallas_src>

<mosaic_0001>
module attributes {stable_mosaic.version = 11 : i64} {
  func.func @kernel(%arg0: memref<2x4x16x128xf32, #tpu.memory_space<any>>, %arg1: memref<2x4x16x128xf32, #tpu.memory_space<any>>, %arg2: memref<2x!tpu.dma_semaphore, #tpu.memory_space<semaphore_mem>>) attributes {dimension_semantics = [], scalar_prefetch = 0 : i64, scratch_operands = 1 : i64, tpu.core_type = #tpu.core_type<tc>} {
    %c0_i32 = arith.constant 0 : i32
    %c0_i32_0 = arith.constant 0 : i32
    %c0_i32_1 = arith.constant 0 : i32
    %c0_i32_2 = arith.constant 0 : i32
    %c0_i32_3 = arith.constant 0 : i32
    %0 = tpu.memref_slice %arg0[%c0_i32_0, %c0_i32_1, %c0_i32_2, %c0_i32_3] : memref<2x4x16x128xf32, #tpu.memory_space<any>> -> memref<2x4x16x128xf32, #tpu.memory_space<any>>
    %c0_i32_4 = arith.constant 0 : i32
    %c0_i32_5 = arith.constant 0 : i32
    %c0_i32_6 = arith.constant 0 : i32
    %c0_i32_7 = arith.constant 0 : i32
    %1 = tpu.memref_slice %arg1[%c0_i32_4, %c0_i32_5, %c0_i32_6, %c0_i32_7] : memref<2x4x16x128xf32, #tpu.memory_space<any>> -> memref<2x4x16x128xf32, #tpu.memory_space<any>>
    %2 = tpu.memref_slice %arg2[%c0_i32] : memref<2x!tpu.dma_semaphore, #tpu.memory_space<semaphore_mem>> -> memref<1x!tpu.dma_semaphore, #tpu.memory_space<semaphore_mem>>
    %3 = tpu.memref_squeeze %2 : memref<1x!tpu.dma_semaphore, #tpu.memory_space<semaphore_mem>> -> memref<!tpu.dma_semaphore, #tpu.memory_space<semaphore_mem>>
    tpu.enqueue_dma source(%0 : memref<2x4x16x128xf32, #tpu.memory_space<any>>) target(%1 : memref<2x4x16x128xf32, #tpu.memory_space<any>>) target_semaphore(%3 : memref<!tpu.dma_semaphore, #tpu.memory_space<semaphore_mem>>)
    %c0_i32_8 = arith.constant 0 : i32
    %c0_i32_9 = arith.constant 0 : i32
    %c0_i32_10 = arith.constant 0 : i32
    %c0_i32_11 = arith.constant 0 : i32
    %c0_i32_12 = arith.constant 0 : i32
    %4 = tpu.memref_slice %arg0[%c0_i32_9, %c0_i32_10, %c0_i32_11, %c0_i32_12] : memref<2x4x16x128xf32, #tpu.memory_space<any>> -> memref<2x4x16x128xf32, #tpu.memory_space<any>>
    %c0_i32_13 = arith.constant 0 : i32
    %c0_i32_14 = arith.constant 0 : i32
    %c0_i32_15 = arith.constant 0 : i32
    %c0_i32_16 = arith.constant 0 : i32
    %5 = tpu.memref_slice %arg1[%c0_i32_13, %c0_i32_14, %c0_i32_15, %c0_i32_16] : memref<2x4x16x128xf32, #tpu.memory_space<any>> -> memref<2x4x16x128xf32, #tpu.memory_space<any>>
    %6 = tpu.memref_slice %arg2[%c0_i32_8] : memref<2x!tpu.dma_semaphore, #tpu.memory_space<semaphore_mem>> -> memref<1x!tpu.dma_semaphore, #tpu.memory_space<semaphore_mem>>
    %7 = tpu.memref_squeeze %6 : memref<1x!tpu.dma_semaphore, #tpu.memory_space<semaphore_mem>> -> memref<!tpu.dma_semaphore, #tpu.memory_space<semaphore_mem>>
    tpu.wait_dma2 semaphore(%7 : memref<!tpu.dma_semaphore, #tpu.memory_space<semaphore_mem>>) src(%4 : memref<2x4x16x128xf32, #tpu.memory_space<any>>) dst(%5 : memref<2x4x16x128xf32, #tpu.memory_space<any>>)
    return
  }
}

</mosaic_0001>

<bundles_post_ra>
// kernel: tpu_custom_call.1
= control target key start
LH: loop header
LB: loop body
LE: loop exit
PB: predicated region body
PF: predicated region fallthrough
CT: control target
= control target key end

     0   :  { %s42_s12 = smov [#allocation2]   ;;  %s43_s13 = smov [#allocation3]   ;;  %s61_s0 = inlined_call_operand.hbm [shape: f32[2,4,16,128], index: 0, kind: input, shape index: {}]   ;;  %s62_s1 = inlined_call_operand.hbm [shape: f32[2,4,16,128], index: 1, kind: output, shape index: {}]  }
   0x1   :  { %s10_s8 = sshll.u32 %s61_s0, 4  ;;  %s12_s11 = sshll.u32 %s62_s1, 4  ;;  %s11_s8 = int_to_ptr.hbm [resolvable:$true] %s10_s8  ;;  %s13_s11 = int_to_ptr.hbm [resolvable:$true] %s12_s11 }
   0x2   :  { %s44_s14 = smov 0  }
   0x3   :  { %16 = dma.general %s11_s8, 2048, %s13_s11, %s42_s12, %s43_s13, [#allocation4], %s44_s14, 0  }
   0x4   :  { %40 = dma.done.wait [#allocation2], 2048 }
   0x5   :  { %41 = vsyncadd [#allocation2], 4294965248 }
   0x6   :  { %22 = vsyncmov [#allocation2] }
   0x9   :  { %s23_s15 = vpop.sfrf %22 }
   0xa   :  { %p35_p0 = scmp.ne.s32.totalorder %s23_s15, 0 }
   0xc   :  { %27 = shalt.err (%p35_p0)  }
   0xd   :  { %29 = vsyncmov [#allocation2 + $0x1] }
  0x10   :  { %s30_s16 = vpop.sfrf %29 }
  0x11   :  { %p36_p1 = scmp.ne.s32.totalorder %s30_s16, 0 }
  0x13   :  { %34 = shalt.err (%p36_p1)  }

</bundles_post_ra>
